<compile_context>
chip_gen: v6e
topology: v6e:2x2x1
jax: 0.10.0
libtpu: 0.0.40
codegen_flags: <defaults>
</compile_context>

<pallas_src>
import functools

import jax
import jax.numpy as jnp
from jax.experimental import pallas as pl
from jax.experimental.pallas import tpu as pltpu

_NEG_SLOPE = 0.01  # torch.nn.LeakyReLU default


def _leaky_relu(x, slope=_NEG_SLOPE):
    return jnp.where(x > 0, x, slope * x)


def net_kernel(x_ref, wT_ref, b_ref, w2T_ref, b2_ref, o_ref):
    # One batch tile per grid step; weights/biases are full-resident in VMEM
    # (constant index_maps), pre-transposed to (in, out) layout so the MXU is
    # fed directly with no in-kernel transposes.
    x = x_ref[...]                     # (TILE_B, F)
    wT = wT_ref[...]                   # (F, F)   fc weight, (in, out) layout
    b = b_ref[...]                     # (1, F)

    # h = lr(fc(x))
    h = _leaky_relu(jnp.dot(x, wT, preferred_element_type=jnp.float32) + b)
    # h = lr(fc(h))  -- same layer applied again (single W load reused)
    h = _leaky_relu(jnp.dot(h, wT, preferred_element_type=jnp.float32) + b)
    # out = fc2(h)
    o_ref[...] = (
        jnp.dot(h, w2T_ref[...], preferred_element_type=jnp.float32) + b2_ref[...]
    )


def _round_up(n, m):
    return ((n + m - 1) // m) * m


def prepare_params(w_fc, b_fc, w_fc2, b_fc2):
    """One-time parameter prep: PyTorch (out, in) layout -> (in, out) layout."""
    return (
        jnp.asarray(w_fc, jnp.float32).T,                 # (F, F)
        jnp.asarray(b_fc, jnp.float32).reshape(1, -1),    # (1, F)
        jnp.asarray(w_fc2, jnp.float32).T,                # (F, O)
        jnp.asarray(b_fc2, jnp.float32).reshape(1, -1),   # (1, O)
    )


@functools.partial(jax.jit, static_argnames=("tile_b", "padded_b"))
def _net_forward_impl(x, wT, b, w2T, b2, *, tile_b, padded_b):
    B, F = x.shape
    O = w2T.shape[1]

    # Only the batch is padded (to the sublane-aligned tile); padded rows
    # compute garbage that is sliced off below.  No feature/output padding.
    xp = x if padded_b == B else jnp.pad(x, ((0, padded_b - B), (0, 0)))

    out = pl.pallas_call(
        net_kernel,
        out_shape=jax.ShapeDtypeStruct((padded_b, O), jnp.float32),
        grid=(padded_b // tile_b,),
        in_specs=[
            pl.BlockSpec((tile_b, F), lambda i: (i, 0)),  # x: tiled over batch
            pl.BlockSpec((F, F), lambda i: (0, 0)),       # fc weight, resident
            pl.BlockSpec((1, F), lambda i: (0, 0)),       # fc bias
            pl.BlockSpec((F, O), lambda i: (0, 0)),       # fc2 weight, resident
            pl.BlockSpec((1, O), lambda i: (0, 0)),       # fc2 bias
        ],
        out_specs=pl.BlockSpec((tile_b, O), lambda i: (i, 0)),
        compiler_params=pltpu.CompilerParams(
            dimension_semantics=("parallel",),   # shard batch tiles across TCs
            vmem_limit_bytes=32 * 1024 * 1024,   # safe on v5e/v6e/v7x
        ),
    )(xp, wT, b, w2T, b2)

    return out[:B]


def net_forward(x, params, *, tile_b=2048):
    """Net forward. `params` comes from prepare_params() (done once)."""
    wT, b, w2T, b2 = params
    B = x.shape[0]
    # Sublane-aligned batch tile; small batches get one tile, large batches
    # get many pipelined / TensorCore-sharded tiles.
    tile = min(tile_b, _round_up(B, 8))
    padded_b = _round_up(B, tile)
    return _net_forward_impl(x, wT, b, w2T, b2, tile_b=tile, padded_b=padded_b)


def _init_linear(key, out_features, in_features):
    # Deterministic init mimicking torch.nn.Linear default (uniform +-1/sqrt(in)).
    kw, kb = jax.random.split(key)
    bound = 1.0 / jnp.sqrt(jnp.float32(in_features))
    w = jax.random.uniform(kw, (out_features, in_features), jnp.float32, -bound, bound)
    b = jax.random.uniform(kb, (out_features,), jnp.float32, -bound, bound)
    return w, b


def _reference(x, w_fc, b_fc, w_fc2, b_fc2):
    h = _leaky_relu(x @ w_fc.T + b_fc)
    h = _leaky_relu(h @ w_fc.T + b_fc)
    return h @ w_fc2.T + b_fc2


if __name__ == "__main__":
    n_features = 32
    n_output = 4
    batch = 8

    key = jax.random.PRNGKey(0)
    k_x, k_fc, k_fc1, k_fc2, k_big = jax.random.split(key, 5)

    x = jax.random.normal(k_x, (batch, n_features), jnp.float32)
    w_fc, b_fc = _init_linear(k_fc, n_features, n_features)      # self.fc
    _w_fc1, _b_fc1 = _init_linear(k_fc1, 32, n_features)         # self.fc1 (unused in forward)
    w_fc2, b_fc2 = _init_linear(k_fc2, n_output, n_features)     # self.fc2

    params = prepare_params(w_fc, b_fc, w_fc2, b_fc2)

    # Small-batch case (single tile).
    out = jax.block_until_ready(net_forward(x, params))
    ref = _reference(x, w_fc, b_fc, w_fc2, b_fc2)
    assert out.shape == (batch, n_output)
    assert jnp.allclose(out, ref, atol=1e-4, rtol=1e-4), "mismatch (small batch)"

    # Exercise the multi-tile (grid > 1) path with a modest batch and a small
    # tile so the batch index_map + padding logic is validated as well.
    x_big = jax.random.normal(k_big, (300, n_features), jnp.float32)
    out_big = jax.block_until_ready(net_forward(x_big, params, tile_b=128))
    ref_big = _reference(x_big, w_fc, b_fc, w_fc2, b_fc2)
    assert out_big.shape == (300, n_output)
    assert jnp.allclose(out_big, ref_big, atol=1e-4, rtol=1e-4), "mismatch (tiled batch)"

    print("KERNEL_OK")
</pallas_src>

<mosaic_0001>
module attributes {stable_mosaic.version = 11 : i64} {
  func.func @net_kernel(%arg0: i32, %arg1: memref<8x32xf32, #tpu.memory_space<vmem>>, %arg2: memref<32x32xf32, #tpu.memory_space<vmem>>, %arg3: memref<1x32xf32, #tpu.memory_space<vmem>>, %arg4: memref<32x4xf32, #tpu.memory_space<vmem>>, %arg5: memref<1x4xf32, #tpu.memory_space<vmem>>, %arg6: memref<8x4xf32, #tpu.memory_space<vmem>>) attributes {dimension_semantics = [#tpu.dimension_semantics<parallel>], iteration_bounds = array<i64: 1>, scalar_prefetch = 0 : i64, scratch_operands = 0 : i64, tpu.core_type = #tpu.core_type<tc>, window_params = [{transform_indices = @transform_0, window_bounds = array<i64: 8, 32>}, {pipeline_mode = #tpu.pipeline_mode<synchronous>, transform_indices = @transform_1, window_bounds = array<i64: 32, 32>}, {pipeline_mode = #tpu.pipeline_mode<synchronous>, transform_indices = @transform_2, window_bounds = array<i64: 1, 32>}, {pipeline_mode = #tpu.pipeline_mode<synchronous>, transform_indices = @transform_3, window_bounds = array<i64: 32, 4>}, {pipeline_mode = #tpu.pipeline_mode<synchronous>, transform_indices = @transform_4, window_bounds = array<i64: 1, 4>}, {transform_indices = @transform_5, window_bounds = array<i64: 8, 4>}]} {
    %c0 = arith.constant 0 : index
    %c0_0 = arith.constant 0 : index
    %0 = vector.load %arg1[%c0, %c0_0] : memref<8x32xf32, #tpu.memory_space<vmem>>, vector<8x32xf32>
    %c0_1 = arith.constant 0 : index
    %c0_2 = arith.constant 0 : index
    %1 = vector.load %arg2[%c0_1, %c0_2] : memref<32x32xf32, #tpu.memory_space<vmem>>, vector<32x32xf32>
    %c0_3 = arith.constant 0 : index
    %c0_4 = arith.constant 0 : index
    %2 = vector.load %arg3[%c0_3, %c0_4] : memref<1x32xf32, #tpu.memory_space<vmem>>, vector<1x32xf32>
    %cst = arith.constant dense<0.000000e+00> : vector<8x32xf32>
    %3 = tpu.matmul %0, %1, %cst {dimension_numbers = #tpu.dot_dimension_numbers<[1], [0], [0], [1], [0, 0, 1, 1], [], []>} : vector<8x32xf32>, vector<32x32xf32>, vector<8x32xf32> -> vector<8x32xf32>
    %4 = vector.broadcast %2 : vector<1x32xf32> to vector<8x32xf32>
    %5 = arith.addf %3, %4 : vector<8x32xf32>
    %cst_5 = arith.constant 0.000000e+00 : f32
    %6 = vector.broadcast %cst_5 : f32 to vector<8x32xf32>
    %7 = arith.cmpf ogt, %5, %6 : vector<8x32xf32>
    %cst_6 = arith.constant 0.00999999977 : f32
    %8 = vector.broadcast %cst_6 : f32 to vector<8x32xf32>
    %9 = arith.mulf %8, %5 : vector<8x32xf32>
    %10 = arith.select %7, %5, %9 : vector<8x32xi1>, vector<8x32xf32>
    %cst_7 = arith.constant dense<0.000000e+00> : vector<8x32xf32>
    %11 = tpu.matmul %10, %1, %cst_7 {dimension_numbers = #tpu.dot_dimension_numbers<[1], [0], [0], [1], [0, 0, 1, 1], [], []>} : vector<8x32xf32>, vector<32x32xf32>, vector<8x32xf32> -> vector<8x32xf32>
    %12 = vector.broadcast %2 : vector<1x32xf32> to vector<8x32xf32>
    %13 = arith.addf %11, %12 : vector<8x32xf32>
    %cst_8 = arith.constant 0.000000e+00 : f32
    %14 = vector.broadcast %cst_8 : f32 to vector<8x32xf32>
    %15 = arith.cmpf ogt, %13, %14 : vector<8x32xf32>
    %cst_9 = arith.constant 0.00999999977 : f32
    %16 = vector.broadcast %cst_9 : f32 to vector<8x32xf32>
    %17 = arith.mulf %16, %13 : vector<8x32xf32>
    %18 = arith.select %15, %13, %17 : vector<8x32xi1>, vector<8x32xf32>
    %c0_10 = arith.constant 0 : index
    %c0_11 = arith.constant 0 : index
    %19 = vector.load %arg4[%c0_10, %c0_11] : memref<32x4xf32, #tpu.memory_space<vmem>>, vector<32x4xf32>
    %cst_12 = arith.constant dense<0.000000e+00> : vector<8x4xf32>
    %20 = tpu.matmul %18, %19, %cst_12 {dimension_numbers = #tpu.dot_dimension_numbers<[1], [0], [0], [1], [0, 0, 1, 1], [], []>} : vector<8x32xf32>, vector<32x4xf32>, vector<8x4xf32> -> vector<8x4xf32>
    %c0_13 = arith.constant 0 : index
    %c0_14 = arith.constant 0 : index
    %21 = vector.load %arg5[%c0_13, %c0_14] : memref<1x4xf32, #tpu.memory_space<vmem>>, vector<1x4xf32>
    %22 = vector.broadcast %21 : vector<1x4xf32> to vector<8x4xf32>
    %23 = arith.addf %20, %22 : vector<8x4xf32>
    %c0_15 = arith.constant 0 : index
    %c0_16 = arith.constant 0 : index
    %24 = vector.load %arg6[%c0_15, %c0_16] : memref<8x4xf32, #tpu.memory_space<vmem>>, vector<8x4xf32>
    tpu.vector_store %arg6[%c0_15, %c0_16], %23 {strides = array<i32>} : memref<8x4xf32, #tpu.memory_space<vmem>>, vector<8x4xf32>,
    return
  }
  func.func @transform_0(%arg0: i32) -> (i32, i32) {
    %c0_i32 = arith.constant 0 : i32
    %c0_i32_0 = arith.constant 0 : i32
    return %arg0, %c0_i32 : i32, i32
  }
  func.func @transform_1(%arg0: i32) -> (i32, i32) {
    %c0_i32 = arith.constant 0 : i32
    %c0_i32_0 = arith.constant 0 : i32
    %c0_i32_1 = arith.constant 0 : i32
    return %c0_i32, %c0_i32_0 : i32, i32
  }
  func.func @transform_2(%arg0: i32) -> (i32, i32) {
    %c0_i32 = arith.constant 0 : i32
    %c0_i32_0 = arith.constant 0 : i32
    %c0_i32_1 = arith.constant 0 : i32
    return %c0_i32, %c0_i32_0 : i32, i32
  }
  func.func @transform_3(%arg0: i32) -> (i32, i32) {
    %c0_i32 = arith.constant 0 : i32
    %c0_i32_0 = arith.constant 0 : i32
    %c0_i32_1 = arith.constant 0 : i32
    return %c0_i32, %c0_i32_0 : i32, i32
  }
  func.func @transform_4(%arg0: i32) -> (i32, i32) {
    %c0_i32 = arith.constant 0 : i32
    %c0_i32_0 = arith.constant 0 : i32
    %c0_i32_1 = arith.constant 0 : i32
    return %c0_i32, %c0_i32_0 : i32, i32
  }
  func.func @transform_5(%arg0: i32) -> (i32, i32) {
    %c0_i32 = arith.constant 0 : i32
    %c0_i32_0 = arith.constant 0 : i32
    return %arg0, %c0_i32 : i32, i32
  }
}

</mosaic_0001>

<bundles_post_ra>
// kernel: _net_forward_impl.1
= control target key start
LH: loop header
LB: loop body
LE: loop exit
PB: predicated region body
PF: predicated region fallthrough
CT: control target
= control target key end

     0   :  { %10 = vsyncpa [#allocation3], 0  ;;  %s366_s18 = smov [#allocation2]   ;;  %s441_s0 = inlined_call_operand.hbm [shape: f32[8,32], index: 0, kind: input, shape index: {}]   ;;  %s442_s1 = inlined_call_operand.vmem [shape: f32[32,32], index: 1, kind: input, shape index: {}]   ;;  %s443_s2 = inlined_call_operand.vmem [shape: f32[1,32], index: 2, kind: input, shape index: {}]   ;;  %s444_s3 = inlined_call_operand.vmem [shape: f32[32,4], index: 3, kind: input, shape index: {}]   ;;  %s445_s4 = inlined_call_operand.vmem [shape: f32[1,4], index: 4, kind: input, shape index: {}]   ;;  %s446_s5 = inlined_call_operand.vmem [shape: f32[8,4], index: 5, kind: output, shape index: {}]  }
   0x1   :  { %s17_s19 = sshll.u32 %s366_s18, 4  ;;  %s18_s19 = int_to_ptr.vmem [resolvable:$true] %s17_s19 }
   0x2   :  { %s352_s20 = scalar_lea.vmem %s18_s19, 128  ;;  %p357_p1 = scmp.lt.s32.totalorder %s18_s19, %s18_s19 }
   0x3   :  { %p353_p0 = scmp.ne.s32.totalorder %s18_s19, %s352_s20  ;;  %p358_p2 = scmp.lt.s32.totalorder %s352_s20, %s352_s20 }
   0x5   :  { %p359_p3 = por %p358_p2, %p357_p1 }
   0x7   :  { %p360_p4 = pnand %p359_p3, %p353_p0 }
   0x9   :  { %363 = shalt.err (!%p360_p4)
}
   0xa   :  { %20 = dma.hbm_to_vmem [thread:$0]  %s441_s0, 128, %s18_s19, [#allocation3]  }
   0xb   :  { %364 = dma.done.wait [#allocation3], 128  }
   0xc   :  { %365 = vsyncadd [#allocation3], 4294967168  ;;  %v367_v0 = vmov 0.0   ;;  %vm368_vm0 = vmmov 0   ;;  %v36_v1 = vld [vmem:[%s442_s1 + $0x18] sm:$0xff]  ;;  %v35_v2 = vld [vmem:[%s442_s1 + $0x10] sm:$0xff] }
   0xd   :  { %308 = vmatprep.subr.mxu0 %v367_v0  ;;  %316 = vmatprep.mubr.msk.f32.mxu0 %vm368_vm0, %v367_v0  ;;  %v34_v3 = vld [vmem:[%s442_s1 + $0x8] sm:$0xff]  ;;  %v33_v4 = vld [vmem:[%s442_s1] sm:$0xff]  ;;  %vm44_vm1 = vcmask 261120   ;;  %v200_v6 = vld [vmem:[%s444_s3 + $0x18] sm:$0xff]  ;;  %vm281_vm4 = vcmask 31744  }
   0xe   :  { %319 = vmatprep.subr.mxu1 %v367_v0  ;;  %327 = vmatprep.mubr.msk.f32.mxu1 %vm368_vm0, %v367_v0  ;;  %v32_v5 = vld [vmem:[#allocation2] sm:$0xff]  ;;  %v199_v13 = vld [vmem:[%s444_s3 + $0x10] sm:$0xff]  ;;  %v198_v14 = vld [vmem:[%s444_s3 + $0x8] sm:$0xff] }
   0xf   :  { %309 = vmatpush3.msra.mxu0 %v36_v1  ;;  %320 = vmatpush3.msra.mxu1 %v36_v1  ;;  %v288_v7 = vld [vmem:[%s443_s2] ss:$0 sm:$0xff] }
  0x10   :  { %310 = vmatprep.subr.mxu0 %v367_v0  ;;  %321 = vmatprep.subr.mxu1 %v367_v0  ;;  %v197_v15 = vld [vmem:[%s444_s3] sm:$0xff] }
  0x11   :  { %311 = vmatpush3.msra.mxu0 %v35_v2  ;;  %322 = vmatpush3.msra.mxu1 %v35_v2  ;;  %v291_v21 = vld [vmem:[%s445_s4] ss:$0 sm:$0xff] }
  0x12   :  { %312 = vmatprep.subr.mxu0 %v367_v0  ;;  %323 = vmatprep.subr.mxu1 %v367_v0 }
  0x13   :  { %313 = vmatpush3.msra.mxu0 %v34_v3  ;;  %324 = vmatpush3.msra.mxu1 %v34_v3 }
  0x14   :  { %314 = vmatprep.subr.mxu0 %v367_v0  ;;  %325 = vmatprep.subr.mxu1 %v367_v0 }
  0x15   :  { %315 = vmatpush3.msra.mxu0 %v33_v4  ;;  %326 = vmatpush3.msra.mxu1 %v33_v4 }
  0x16   :  { %317 = vmatmul.mubr.msk.f32.vlgmr.msra.gmra.mxu0 %vm44_vm1, %v32_v5  ;;  %330 = vmatprep.subr.mxu0 %v367_v0 }
  0x17   :  { %338 = vmatprep.mubr.msk.f32.mxu0 %vm368_vm0, %v367_v0  ;;  %331 = vmatpush3.msra.mxu0 %v200_v6 }
  0x18   :  { %332 = vmatprep.subr.mxu0 %v367_v0 }
  0x19   :  { %333 = vmatpush3.msra.mxu0 %v199_v13 }
  0x1a   :  { %334 = vmatprep.subr.mxu0 %v367_v0 }
  0x1b   :  { %335 = vmatpush3.msra.mxu0 %v198_v14 }
  0x1c   :  { %336 = vmatprep.subr.mxu0 %v367_v0 }
  0x1d   :  { %337 = vmatpush3.msra.mxu0 %v197_v15 }
  0xd6   :  { %v114_v8 = vpop.f32.mrf.mxu0 }
  0xd7   :  { %v115_v9 = vadd.f32 %v288_v7, %v114_v8 }
  0xd8   :  { %v318_v10 = vpop.f32.mrf.mxu0 }
  0xd9   :  { %vm118_vm2 = vcmp.gt.f32.partialorder %v115_v9, 0.0  ;;  %v119_v11 = vmul.f32 0.01, %v115_v9 }
  0xdb   :  { %v120_v12 = vsel %vm118_vm2, %v115_v9, %v119_v11 }
  0xdc   :  { %328 = vmatmul.mubr.msk.f32.vlgmr.msra.gmra.mxu1 %vm44_vm1, %v120_v12 }
 0x19c   :  { %v190_v16 = vpop.f32.mrf.mxu1 }
 0x19d   :  { %v191_v17 = vadd.f32 %v288_v7, %v190_v16 }
 0x19e   :  { %v329_v18 = vpop.f32.mrf.mxu1 }
 0x19f   :  { %vm194_vm3 = vcmp.gt.f32.partialorder %v191_v17, 0.0  ;;  %v195_v19 = vmul.f32 0.01, %v191_v17 }
 0x1a1   :  { %v196_v20 = vsel %vm194_vm3, %v191_v17, %v195_v19 }
 0x1a2   :  { %339 = vmatmul.mubr.msk.f32.vlgmr.msra.gmra.mxu0 %vm44_vm1, %v196_v20 }
 0x262   :  { %v277_v22 = vpop.f32.mrf.mxu0 }
 0x263   :  { %v278_v23 = vadd.f32 %v291_v21, %v277_v22 }
 0x264   :  { %v340_v24 = vpop.f32.mrf.mxu0 }
 0x265   :  { %282 = vst.msk [vmem:[%s446_s5] sm:$0xff] %vm281_vm4, %v278_v23 }
 0x266   :  { %287 = vsyncpa [#allocation3], 1 }

</bundles_post_ra>
